<compile_context>
chip_gen: v7x
topology: tpu7x:2x2x1
jax: 0.10.0
libtpu: 0.0.40
codegen_flags: <defaults>
</compile_context>

<pallas_src>
import jax
import jax.numpy as jnp
from jax.experimental import pallas as pl
from jax.experimental.pallas import tpu as pltpu


def _round_up(x, m):
    return ((x + m - 1) // m) * m


# rot6d component order used inside the fused layout: [e0|e2|e4|e1|e3|e5]
# (torch reshape(-1, 3, 2): a1 = (e0, e2, e4), a2 = (e1, e3, e5)).
_COMP_ORDER = (0, 2, 4, 1, 3, 5)
_INV_COMP_ORDER = (0, 3, 1, 4, 2, 5)


def _make_kernel(pose_num, out_width):
    P = pose_num
    PC = 6 * P            # pose columns (component-grouped)
    RC = 9 * P            # rotmat columns
    SC = 10 + 3           # shape + cam columns
    PAD = out_width - (PC + RC + SC)

    def kernel(feat_ref, w_ref, b_ref, out_ref):
        # --- single fused MXU matmul for all heads (block-diagonal weight) ----
        y = jnp.dot(feat_ref[...], w_ref[...],
                    preferred_element_type=jnp.float32)
        y = y + b_ref[...]                     # folded bias + SMPL mean params

        # --- rot6d -> rotmat on contiguous 24-lane component groups -----------
        a1x = y[:, 0 * P:1 * P]
        a1y = y[:, 1 * P:2 * P]
        a1z = y[:, 2 * P:3 * P]
        a2x = y[:, 3 * P:4 * P]
        a2y = y[:, 4 * P:5 * P]
        a2z = y[:, 5 * P:6 * P]

        eps2 = jnp.float32(1e-24)              # == clamp(norm, 1e-12), squared
        inv1 = jax.lax.rsqrt(
            jnp.maximum(a1x * a1x + a1y * a1y + a1z * a1z, eps2))   # EUP slot
        b1x = a1x * inv1
        b1y = a1y * inv1
        b1z = a1z * inv1

        d = b1x * a2x + b1y * a2y + b1z * a2z
        u2x = a2x - d * b1x
        u2y = a2y - d * b1y
        u2z = a2z - d * b1z
        inv2 = jax.lax.rsqrt(
            jnp.maximum(u2x * u2x + u2y * u2y + u2z * u2z, eps2))   # EUP slot
        b2x = u2x * inv2
        b2y = u2y * inv2
        b2z = u2z * inv2

        b3x = b1y * b2z - b1z * b2y
        b3y = b1z * b2x - b1x * b2z
        b3z = b1x * b2y - b1y * b2x

        tb = y.shape[0]
        # One lane-dense slab, one unmasked full-tile store.
        slab = jnp.concatenate(
            [y[:, :PC],                                    # rot6d (comp-grouped)
             b1x, b2x, b3x, b1y, b2y, b3y, b1z, b2z, b3z,  # rotmat (row-major)
             y[:, PC:PC + SC],                             # shape | cam
             jnp.zeros((tb, PAD), jnp.float32)],           # lane padding
            axis=-1)
        out_ref[...] = slab

    return kernel


def build_fused_params(params, pose_num, pose_dim, shape_dim, cam_dim):
    """One-time parameter prep: block-diagonal fused weight + folded bias."""
    P, Dp, Ds, Dc = pose_num, pose_dim, shape_dim, cam_dim
    K = P * Dp + Ds + Dc
    N = 6 * P + 10 + 3
    K_pad = _round_up(K, 128)
    N_pad = _round_up(N, 128)

    comp = jnp.array(_COMP_ORDER)

    # Per-joint pose weights -> block-diagonal, component-grouped columns:
    #   W[n*Dp + k, g*P + n] = pose_w[n, k, COMP_ORDER[g]]
    pw = params["pose_w"][:, :, comp]                        # (P, Dp, 6) [n,k,g]
    blk = jnp.einsum("nkg,nm->nkgm", pw, jnp.eye(P, dtype=jnp.float32))
    blk = blk.reshape(P * Dp, 6 * P)

    W = jnp.zeros((K_pad, N_pad), jnp.float32)
    W = W.at[:P * Dp, :6 * P].set(blk)
    W = W.at[P * Dp:P * Dp + Ds, 6 * P:6 * P + 10].set(params["shape_w"])
    W = W.at[P * Dp + Ds:K, 6 * P + 10:N].set(params["cam_w"])

    # Fold biases + mean params once (constants).
    pb = (params["pose_b"] + params["init_pose"])[:, comp]   # (P, 6) [n, g]
    bias = jnp.zeros((1, N_pad), jnp.float32)
    bias = bias.at[0, :6 * P].set(pb.T.reshape(-1))          # flat idx g*P + n
    bias = bias.at[0, 6 * P:6 * P + 10].set(
        (params["shape_b"] + params["init_shape"]).reshape(-1))
    bias = bias.at[0, 6 * P + 10:N].set(
        (params["cam_b"] + params["init_cam"]).reshape(-1))

    return {"w": W, "b": bias, "pose_num": P, "pose_dim": Dp,
            "k": K, "k_pad": K_pad, "n_pad": N_pad}


def mlp_head_forward(pose_feat, shape_feat, cam_feat, fused):
    B, P, Dp = pose_feat.shape
    K, K_pad, N_pad = fused["k"], fused["k_pad"], fused["n_pad"]
    OUT = 6 * P + 9 * P + 10 + 3
    OUT_pad = _round_up(OUT, 128)

    tb = min(128, _round_up(B, 8))               # sublane-aligned batch tile
    B_pad = _round_up(B, tb)

    # glue: fuse inputs into one lane-dense activation slab, zero-pad to tiles
    feat = jnp.concatenate(
        [pose_feat.reshape(B, P * Dp), shape_feat, cam_feat], axis=-1)
    feat = jnp.pad(feat, ((0, B_pad - B), (0, K_pad - K)))

    slab = pl.pallas_call(
        _make_kernel(P, OUT_pad),
        out_shape=jax.ShapeDtypeStruct((B_pad, OUT_pad), jnp.float32),
        grid=(B_pad // tb,),
        in_specs=[
            pl.BlockSpec((tb, K_pad), lambda i: (i, 0)),
            pl.BlockSpec((K_pad, N_pad), lambda i: (0, 0)),
            pl.BlockSpec((1, N_pad), lambda i: (0, 0)),
        ],
        out_specs=pl.BlockSpec((tb, OUT_pad), lambda i: (i, 0)),
        compiler_params=pltpu.CompilerParams(
            dimension_semantics=("parallel",)),
    )(feat, fused["w"], fused["b"])

    # glue-only: slice the slab back into the user-facing layouts
    slab = slab[:B]
    comp = slab[:, :6 * P].reshape(B, 6, P)
    pred_pose = jnp.transpose(comp[:, jnp.array(_INV_COMP_ORDER), :], (0, 2, 1))
    rot = slab[:, 6 * P:15 * P].reshape(B, 9, P)
    pred_rotmat = jnp.transpose(rot, (0, 2, 1)).reshape(B, P, 3, 3)
    pred_shape = slab[:, 15 * P:15 * P + 10]
    pred_cam = slab[:, 15 * P + 10:15 * P + 13]
    return {"pred_pose": pred_pose, "pred_rotmat": pred_rotmat,
            "pred_cam": pred_cam, "pred_shape": pred_shape}


# ------------------------- pure-JAX reference (for checking) -------------------
def _reference_forward(pose_feat, shape_feat, cam_feat, p):
    hp = jax.lax.Precision.HIGHEST
    pred_pose = (jnp.einsum("bnd,nde->bne", pose_feat, p["pose_w"], precision=hp)
                 + p["pose_b"][None] + p["init_pose"][None])
    pred_shape = (jnp.dot(shape_feat, p["shape_w"], precision=hp)
                  + p["shape_b"] + p["init_shape"])
    pred_cam = (jnp.dot(cam_feat, p["cam_w"], precision=hp)
                + p["cam_b"] + p["init_cam"])

    B, N, _ = pred_pose.shape
    x = pred_pose.reshape(-1, 3, 2)
    a1, a2 = x[:, :, 0], x[:, :, 1]
    eps = 1e-12
    b1 = a1 / jnp.maximum(jnp.linalg.norm(a1, axis=-1, keepdims=True), eps)
    u2 = a2 - jnp.sum(b1 * a2, axis=-1, keepdims=True) * b1
    b2 = u2 / jnp.maximum(jnp.linalg.norm(u2, axis=-1, keepdims=True), eps)
    b3 = jnp.cross(b1, b2)
    rotmat = jnp.stack([b1, b2, b3], axis=-1).reshape(B, N, 3, 3)
    return {"pred_pose": pred_pose, "pred_rotmat": rotmat,
            "pred_cam": pred_cam, "pred_shape": pred_shape}


def _init_params(key, pose_num, pose_dim, shape_dim, cam_dim):
    ks = jax.random.split(key, 9)
    gain = 0.01  # xavier_uniform gain=0.01 in the module; synthetic deterministic init
    p = {
        "pose_w": gain * jax.random.normal(ks[0], (pose_num, pose_dim, 6), jnp.float32),
        "pose_b": 0.01 * jax.random.normal(ks[1], (pose_num, 6), jnp.float32),
        "shape_w": gain * jax.random.normal(ks[2], (shape_dim, 10), jnp.float32),
        "shape_b": 0.01 * jax.random.normal(ks[3], (1, 10), jnp.float32),
        "cam_w": gain * jax.random.normal(ks[4], (cam_dim, 3), jnp.float32),
        "cam_b": 0.01 * jax.random.normal(ks[5], (1, 3), jnp.float32),
        # synthetic SMPL mean params (identity-ish rot6d + small noise) in the
        # already-"repeated" (24, 6) layout used by the forward pass.
        "init_pose": (jnp.tile(jnp.array([1., 0., 0., 1., 0., 0.], jnp.float32),
                               (pose_num, 1))
                      + 0.05 * jax.random.normal(ks[6], (pose_num, 6), jnp.float32)),
        "init_shape": 0.1 * jax.random.normal(ks[7], (1, 10), jnp.float32),
        "init_cam": 0.1 * jax.random.normal(ks[8], (1, 3), jnp.float32),
    }
    return p


if __name__ == "__main__":
    B, POSE_NUM, POSE_DIM, SHAPE_DIM, CAM_DIM = 2, 24, 32, 32, 32
    root = jax.random.PRNGKey(0)
    k_in, k_par = jax.random.split(root, 2)
    k1, k2, k3 = jax.random.split(k_in, 3)

    pose_feat = jax.random.normal(k1, (B, POSE_NUM, POSE_DIM), jnp.float32)
    shape_feat = jax.random.normal(k2, (B, SHAPE_DIM), jnp.float32)
    cam_feat = jax.random.normal(k3, (B, CAM_DIM), jnp.float32)

    params = _init_params(k_par, POSE_NUM, POSE_DIM, SHAPE_DIM, CAM_DIM)
    fused = build_fused_params(params, POSE_NUM, POSE_DIM, SHAPE_DIM, CAM_DIM)

    out = mlp_head_forward(pose_feat, shape_feat, cam_feat, fused)
    out = jax.block_until_ready(out)

    ref = _reference_forward(pose_feat, shape_feat, cam_feat, params)
    for name in ("pred_pose", "pred_rotmat", "pred_cam", "pred_shape"):
        err = float(jnp.max(jnp.abs(out[name] - ref[name])))
        assert err < 1e-3, f"{name} mismatch: max abs err {err}"

    print("KERNEL_OK")
</pallas_src>

<mosaic_0001>
module attributes {stable_mosaic.version = 11 : i64} {
  func.func @kernel(%arg0: i32, %arg1: memref<8x896xf32, #tpu.memory_space<vmem>>, %arg2: memref<896x256xf32, #tpu.memory_space<vmem>>, %arg3: memref<1x256xf32, #tpu.memory_space<vmem>>, %arg4: memref<8x384xf32, #tpu.memory_space<vmem>>) attributes {dimension_semantics = [#tpu.dimension_semantics<parallel>], iteration_bounds = array<i64: 1>, scalar_prefetch = 0 : i64, scratch_operands = 0 : i64, tpu.core_type = #tpu.core_type<tc>, window_params = [{transform_indices = @transform_0, window_bounds = array<i64: 8, 896>}, {pipeline_mode = #tpu.pipeline_mode<synchronous>, transform_indices = @transform_1, window_bounds = array<i64: 896, 256>}, {pipeline_mode = #tpu.pipeline_mode<synchronous>, transform_indices = @transform_2, window_bounds = array<i64: 1, 256>}, {transform_indices = @transform_3, window_bounds = array<i64: 8, 384>}]} {
    %c0 = arith.constant 0 : index
    %c0_0 = arith.constant 0 : index
    %0 = vector.load %arg1[%c0, %c0_0] : memref<8x896xf32, #tpu.memory_space<vmem>>, vector<8x896xf32>
    %c0_1 = arith.constant 0 : index
    %c0_2 = arith.constant 0 : index
    %1 = vector.load %arg2[%c0_1, %c0_2] : memref<896x256xf32, #tpu.memory_space<vmem>>, vector<896x256xf32>
    %cst = arith.constant dense<0.000000e+00> : vector<8x256xf32>
    %2 = tpu.matmul %0, %1, %cst {dimension_numbers = #tpu.dot_dimension_numbers<[1], [0], [0], [1], [0, 0, 1, 1], [], []>} : vector<8x896xf32>, vector<896x256xf32>, vector<8x256xf32> -> vector<8x256xf32>
    %c0_3 = arith.constant 0 : index
    %c0_4 = arith.constant 0 : index
    %3 = vector.load %arg3[%c0_3, %c0_4] : memref<1x256xf32, #tpu.memory_space<vmem>>, vector<1x256xf32>
    %4 = vector.broadcast %3 : vector<1x256xf32> to vector<8x256xf32>
    %5 = arith.addf %2, %4 : vector<8x256xf32>
    %6 = vector.extract_strided_slice %5 {offsets = [0, 0], sizes = [8, 24], strides = [1, 1]} : vector<8x256xf32> to vector<8x24xf32>
    %7 = vector.extract_strided_slice %5 {offsets = [0, 24], sizes = [8, 24], strides = [1, 1]} : vector<8x256xf32> to vector<8x24xf32>
    %8 = vector.extract_strided_slice %5 {offsets = [0, 48], sizes = [8, 24], strides = [1, 1]} : vector<8x256xf32> to vector<8x24xf32>
    %9 = vector.extract_strided_slice %5 {offsets = [0, 72], sizes = [8, 24], strides = [1, 1]} : vector<8x256xf32> to vector<8x24xf32>
    %10 = vector.extract_strided_slice %5 {offsets = [0, 96], sizes = [8, 24], strides = [1, 1]} : vector<8x256xf32> to vector<8x24xf32>
    %11 = vector.extract_strided_slice %5 {offsets = [0, 120], sizes = [8, 24], strides = [1, 1]} : vector<8x256xf32> to vector<8x24xf32>
    %12 = arith.mulf %6, %6 : vector<8x24xf32>
    %13 = arith.mulf %7, %7 : vector<8x24xf32>
    %14 = arith.addf %12, %13 : vector<8x24xf32>
    %15 = arith.mulf %8, %8 : vector<8x24xf32>
    %16 = arith.addf %14, %15 : vector<8x24xf32>
    %cst_5 = arith.constant 1.000000e-24 : f32
    %17 = vector.broadcast %cst_5 : f32 to vector<8x24xf32>
    %18 = arith.maximumf %16, %17 : vector<8x24xf32>
    %19 = math.rsqrt %18 : vector<8x24xf32>
    %20 = arith.mulf %6, %19 : vector<8x24xf32>
    %21 = arith.mulf %7, %19 : vector<8x24xf32>
    %22 = arith.mulf %8, %19 : vector<8x24xf32>
    %23 = arith.mulf %20, %9 : vector<8x24xf32>
    %24 = arith.mulf %21, %10 : vector<8x24xf32>
    %25 = arith.addf %23, %24 : vector<8x24xf32>
    %26 = arith.mulf %22, %11 : vector<8x24xf32>
    %27 = arith.addf %25, %26 : vector<8x24xf32>
    %28 = arith.mulf %27, %20 : vector<8x24xf32>
    %29 = arith.subf %9, %28 : vector<8x24xf32>
    %30 = arith.mulf %27, %21 : vector<8x24xf32>
    %31 = arith.subf %10, %30 : vector<8x24xf32>
    %32 = arith.mulf %27, %22 : vector<8x24xf32>
    %33 = arith.subf %11, %32 : vector<8x24xf32>
    %34 = arith.mulf %29, %29 : vector<8x24xf32>
    %35 = arith.mulf %31, %31 : vector<8x24xf32>
    %36 = arith.addf %34, %35 : vector<8x24xf32>
    %37 = arith.mulf %33, %33 : vector<8x24xf32>
    %38 = arith.addf %36, %37 : vector<8x24xf32>
    %cst_6 = arith.constant 1.000000e-24 : f32
    %39 = vector.broadcast %cst_6 : f32 to vector<8x24xf32>
    %40 = arith.maximumf %38, %39 : vector<8x24xf32>
    %41 = math.rsqrt %40 : vector<8x24xf32>
    %42 = arith.mulf %29, %41 : vector<8x24xf32>
    %43 = arith.mulf %31, %41 : vector<8x24xf32>
    %44 = arith.mulf %33, %41 : vector<8x24xf32>
    %45 = arith.mulf %21, %44 : vector<8x24xf32>
    %46 = arith.mulf %22, %43 : vector<8x24xf32>
    %47 = arith.subf %45, %46 : vector<8x24xf32>
    %48 = arith.mulf %22, %42 : vector<8x24xf32>
    %49 = arith.mulf %20, %44 : vector<8x24xf32>
    %50 = arith.subf %48, %49 : vector<8x24xf32>
    %51 = arith.mulf %20, %43 : vector<8x24xf32>
    %52 = arith.mulf %21, %42 : vector<8x24xf32>
    %53 = arith.subf %51, %52 : vector<8x24xf32>
    %54 = vector.extract_strided_slice %5 {offsets = [0, 0], sizes = [8, 144], strides = [1, 1]} : vector<8x256xf32> to vector<8x144xf32>
    %55 = vector.extract_strided_slice %5 {offsets = [0, 144], sizes = [8, 13], strides = [1, 1]} : vector<8x256xf32> to vector<8x13xf32>
    %cst_7 = arith.constant 0.000000e+00 : f32
    %56 = vector.broadcast %cst_7 : f32 to vector<8x11xf32>
    %57 = tpu.concatenate %54, %20, %42, %47, %21, %43, %50, %22, %44, %53, %55, %56 in 1 : vector<8x144xf32>, vector<8x24xf32>, vector<8x24xf32>, vector<8x24xf32>, vector<8x24xf32>, vector<8x24xf32>, vector<8x24xf32>, vector<8x24xf32>, vector<8x24xf32>, vector<8x24xf32>, vector<8x13xf32>, vector<8x11xf32> -> vector<8x384xf32>
    %c0_8 = arith.constant 0 : index
    %c0_9 = arith.constant 0 : index
    %58 = vector.load %arg4[%c0_8, %c0_9] : memref<8x384xf32, #tpu.memory_space<vmem>>, vector<8x384xf32>
    tpu.vector_store %arg4[%c0_8, %c0_9], %57 {strides = array<i32>} : memref<8x384xf32, #tpu.memory_space<vmem>>, vector<8x384xf32>,
    return
  }
  func.func @transform_0(%arg0: i32) -> (i32, i32) {
    %c0_i32 = arith.constant 0 : i32
    %c0_i32_0 = arith.constant 0 : i32
    return %arg0, %c0_i32 : i32, i32
  }
  func.func @transform_1(%arg0: i32) -> (i32, i32) {
    %c0_i32 = arith.constant 0 : i32
    %c0_i32_0 = arith.constant 0 : i32
    %c0_i32_1 = arith.constant 0 : i32
    return %c0_i32, %c0_i32_0 : i32, i32
  }
  func.func @transform_2(%arg0: i32) -> (i32, i32) {
    %c0_i32 = arith.constant 0 : i32
    %c0_i32_0 = arith.constant 0 : i32
    %c0_i32_1 = arith.constant 0 : i32
    return %c0_i32, %c0_i32_0 : i32, i32
  }
  func.func @transform_3(%arg0: i32) -> (i32, i32) {
    %c0_i32 = arith.constant 0 : i32
    %c0_i32_0 = arith.constant 0 : i32
    return %arg0, %c0_i32 : i32, i32
  }
}

</mosaic_0001>

<bundles_post_ra>
// kernel: tpu_custom_call.1
= control target key start
LH: loop header
LB: loop body
LE: loop exit
PB: predicated region body
PF: predicated region fallthrough
CT: control target
= control target key end

     0   :  { %8 = vsyncpa [#allocation3], 0  ;;  %s1283_s0 = inlined_call_operand.hbm [shape: f32[8,896], index: 0, kind: input, shape index: {}]   ;;  %s1284_s1 = inlined_call_operand.hbm [shape: f32[896,256], index: 1, kind: input, shape index: {}]   ;;  %s1285_s2 = inlined_call_operand.vmem [shape: f32[1,256], index: 2, kind: input, shape index: {}]   ;;  %s1286_s3 = inlined_call_operand.hbm [shape: f32[8,384], index: 3, kind: output, shape index: {}]  }
   0x1   :  { %9 = vsyncpa [#allocation6], 0 }
   0x2   :  { %10 = vsyncpa [#allocation4], 0  ;;  %s1125_s12 = smov [#allocation2]   ;;  %s1126_s14 = smov [#allocation5]  }
   0x3   :  { %s17_s13 = sshll.u32 %s1125_s12, 4  ;;  %s26_s15 = sshll.u32 %s1126_s14, 4  ;;  %s18_s13 = int_to_ptr.vmem [resolvable:$true] %s17_s13  ;;  %s1165_s15 = int_to_ptr.vmem [resolvable:$true] %s26_s15 }
   0x4   :  { %s1053_s18 = scalar_lea.hbm %s1283_s0, 896 }
   0x5   :  { %p1054_p0 = scmp.ne.s32.totalorder %s1283_s0, %s1053_s18  ;;  %p1057_p1 = scmp.lt.u32.totalorder %s1053_s18, %s1283_s0 }
   0x7   :  { %p1059_p2 = pnand %p1057_p1, %p1054_p0 }
   0x9   :  { %1062 = shalt.err (!%p1059_p2)
}
   0xa   :  { %s1063_s23 = scalar_lea.vmem %s18_s13, 896  ;;  %p1068_p4 = scmp.lt.s32.totalorder %s18_s13, %s18_s13 }
   0xb   :  { %p1064_p3 = scmp.ne.s32.totalorder %s18_s13, %s1063_s23  ;;  %p1069_p5 = scmp.lt.s32.totalorder %s1063_s23, %s1063_s23 }
   0xd   :  { %p1070_p6 = por %p1069_p5, %p1068_p4 }
   0xf   :  { %p1071_p7 = pnand %p1070_p6, %p1064_p3 }
  0x11   :  { %1074 = shalt.err (!%p1071_p7)
}
  0x12   :  { %20 = dma.hbm_to_vmem [thread:$0]  %s1283_s0, 896, %s18_s13, [#allocation3]  }
  0x13   :  { %s1075_s28 = scalar_lea.hbm %s1284_s1, 28672 }
  0x14   :  { %p1076_p8 = scmp.ne.s32.totalorder %s1284_s1, %s1075_s28  ;;  %p1079_p9 = scmp.lt.u32.totalorder %s1075_s28, %s1284_s1 }
  0x16   :  { %p1081_p10 = pnand %p1079_p9, %p1076_p8 }
  0x18   :  { %1084 = shalt.err (!%p1081_p10)
}
  0x19   :  { %s1085_s6 = scalar_lea.vmem %s1165_s15, 28672  ;;  %p1090_p12 = scmp.lt.s32.totalorder %s1165_s15, %s1165_s15 }
  0x1a   :  { %p1086_p11 = scmp.ne.s32.totalorder %s1165_s15, %s1085_s6  ;;  %p1091_p13 = scmp.lt.s32.totalorder %s1085_s6, %s1085_s6 }
  0x1c   :  { %p1092_p0 = por %p1091_p13, %p1090_p12 }
  0x1e   :  { %p1093_p1 = pnand %p1092_p0, %p1086_p11 }
  0x20   :  { %1096 = shalt.err (!%p1093_p1)
}
  0x21   :  { %s1127_s0 = smov 256   ;;  %s1128_s7 = smov 16  }
  0x22   :  { %32 = dma.hbm_to_vmem [thread:$0]  %s1284_s1, 28672, %s1165_s15, [#allocation6], %s1127_s0, %s1127_s0, %s1128_s7  }
  0x23   :  { %1119 = dma.done.wait [#allocation3], 896  }
  0x24   :  { %1120 = vsyncadd [#allocation3], 4294966400 }
  0x25   :  { %1121 = dma.done.wait [#allocation6], 28672  }
  0x26   :  { %1122 = vsyncadd [#allocation6], 4294938624  ;;  %v49_v0 = vld [vmem:[#allocation5 + $0x8] sm:$0xff]  ;;  %v51_v1 = vld [vmem:[#allocation5 + $0x18] sm:$0xff]  ;;  %s1131_s11 = smov 80   ;;  %s1132_s12 = smov 56  }
  0x27   :  { %v48_v2 = vld [vmem:[#allocation5] sm:$0xff]  ;;  %v797_v3 = vpack.c.bf16 %v51_v1, %v49_v0  ;;  %v50_v4 = vld [vmem:[#allocation5 + $0x10] sm:$0xff]  ;;  %v177_v5 = vld [vmem:[#allocation5 + $0x408] sm:$0xff]  ;;  %s1133_s13 = smov 24   ;;  %s1134_s14 = smov 48   ;;  %vm604_vm0 = vcmask 457728  }
  0x28   :  { %v179_v6 = vld [vmem:[#allocation5 + $0x418] sm:$0xff]  ;;  %v799_v7 = vpack.c.bf16 %v50_v4, %v48_v2  ;;  %v176_v9 = vld [vmem:[#allocation5 + $0x400] sm:$0xff]  ;;  %v178_v10 = vld [vmem:[#allocation5 + $0x410] sm:$0xff]  ;;  %s1135_s15 = smov 96   ;;  %s1136_s16 = smov 120   ;;  %vm655_vm1 = vcmask 654336  }
  0x29   :  { %v925_v8 = vpack.c.bf16 %v179_v6, %v177_v5  ;;  %v53_v11 = vld [vmem:[#allocation5 + $0x28] sm:$0xff]  ;;  %798 = vmatprep.subr.bf16.mxu1 %v797_v3  ;;  %v927_v12 = vpack.c.bf16 %v178_v10, %v176_v9  ;;  %v55_v13 = vld [vmem:[#allocation5 + $0x38] sm:$0xff]  ;;  %v52_v14 = vld [vmem:[#allocation5 + $0x20] sm:$0xff]  ;;  %s1137_s17 = smov 72   ;;  %s1138_s18 = smov 8   ;;  %vm701_vm2 = vcmask 64512  }
  0x2a   :  { %v54_v15 = vld [vmem:[#allocation5 + $0x30] sm:$0xff]  ;;  %800 = vmatpush1.bf16.msra.mxu1 %v799_v7  ;;  %v801_v16 = vpack.c.bf16 %v55_v13, %v53_v11  ;;  %v181_v18 = vld [vmem:[#allocation5 + $0x428] sm:$0xff]  ;;  %v183_v19 = vld [vmem:[#allocation5 + $0x438] sm:$0xff]  ;;  %s1139_s19 = smov 32   ;;  %s1140_s20 = smov 112   ;;  %vm678_vm3 = vcmask 261120  }
  0x2b   :  { %926 = vmatprep.subr.bf16.mxu0 %v925_v8  ;;  %v803_v17 = vpack.c.bf16 %v54_v15, %v52_v14  ;;  %v180_v20 = vld [vmem:[#allocation5 + $0x420] sm:$0xff]  ;;  %v929_v21 = vpack.c.bf16 %v183_v19, %v181_v18  ;;  %v182_v22 = vld [vmem:[#allocation5 + $0x430] sm:$0xff]  ;;  %v57_v23 = vld [vmem:[#allocation5 + $0x48] sm:$0xff]  ;;  %s1141_s21 = smov 64   ;;  %s1142_s22 = smov 40   ;;  %vm761_vm4 = vcmask 130048  }
  0x2c   :  { %928 = vmatpush1.bf16.msra.mxu0 %v927_v12  ;;  %v59_v24 = vld [vmem:[#allocation5 + $0x58] sm:$0xff]  ;;  %802 = vmatprep.subr.bf16.mxu1 %v801_v16  ;;  %v931_v25 = vpack.c.bf16 %v182_v22, %v180_v20  ;;  %v56_v27 = vld [vmem:[#allocation5 + $0x40] sm:$0xff]  ;;  %v58_v28 = vld [vmem:[#allocation5 + $0x50] sm:$0xff]  ;;  %s1143_s23 = smov 88   ;;  %vm751_vm5 = vcmask 523264   ;;  %vm763_vm6 = vcmask 326656  }
  0x2d   :  { %v805_v26 = vpack.c.bf16 %v59_v24, %v57_v23  ;;  %v185_v29 = vld [vmem:[#allocation5 + $0x448] sm:$0xff]  ;;  %930 = vmatprep.subr.bf16.mxu0 %v929_v21  ;;  %v187_v30 = vld [vmem:[#allocation5 + $0x458] sm:$0xff]  ;;  %v184_v31 = vld [vmem:[#allocation5 + $0x440] sm:$0xff]  ;;  %v807_v33 = vpack.c.bf16 %v58_v28, %v56_v27  ;;  %vm766_vm7 = vcmask 719872   ;;  %vm774_vm8 = vcmask 850944   ;;  %s1144_s24 = smov [#allocation7]  }
  0x2e   :  { %v186_v32 = vld [vmem:[#allocation5 + $0x450] sm:$0xff]  ;;  %804 = vmatpush1.bf16.msra.mxu1 %v803_v17  ;;  %v933_v34 = vpack.c.bf16 %v187_v30, %v185_v29  ;;  %v61_v35 = vld [vmem:[#allocation5 + $0x68] sm:$0xff]  ;;  %v63_v36 = vld [vmem:[#allocation5 + $0x78] sm:$0xff]  ;;  %s787_s25 = sshll.u32 %s1144_s24, 4  ;;  %vm768_vm9 = vcmask 916480   ;;  %vm776_vm10 = vcmask 957440   ;;  %s788_s25 = int_to_ptr.vmem [resolvable:$true] %s787_s25 }
  0x2f   :  { %v60_v37 = vld [vmem:[#allocation5 + $0x60] sm:$0xff]  ;;  %806 = vmatprep.subr.bf16.mxu1 %v805_v26  ;;  %v935_v38 = vpack.c.bf16 %v186_v32, %v184_v31  ;;  %v809_v39 = vpack.c.bf16 %v63_v36, %v61_v35  ;;  %v62_v40 = vld [vmem:[#allocation5 + $0x70] sm:$0xff]  ;;  %v189_v41 = vld [vmem:[#allocation5 + $0x468] sm:$0xff]  ;;  %s1097_s26 = scalar_lea.vmem %s788_s25, 384  ;;  %p1102_p3 = scmp.lt.s32.totalorder %s788_s25, %s788_s25 }
  0x30   :  { %932 = vmatpush1.bf16.msra.mxu0 %v931_v25  ;;  %v191_v42 = vld [vmem:[#allocation5 + $0x478] sm:$0xff]  ;;  %v188_v44 = vld [vmem:[#allocation5 + $0x460] sm:$0xff]  ;;  %v190_v45 = vld [vmem:[#allocation5 + $0x470] sm:$0xff]  ;;  %v811_v48 = vpack.c.bf16 %v62_v40, %v60_v37  ;;  %p1098_p2 = scmp.ne.s32.totalorder %s788_s25, %s1097_s26  ;;  %p1103_p4 = scmp.lt.s32.totalorder %s1097_s26, %s1097_s26 }
  0x31   :  { %934 = vmatprep.subr.bf16.mxu0 %v933_v34  ;;  %v937_v43 = vpack.c.bf16 %v191_v42, %v189_v41  ;;  %v65_v46 = vld [vmem:[#allocation5 + $0x88] sm:$0xff]  ;;  %v67_v47 = vld [vmem:[#allocation5 + $0x98] sm:$0xff]  ;;  %v939_v51 = vpack.c.bf16 %v190_v45, %v188_v44  ;;  %v64_v53 = vld [vmem:[#allocation5 + $0x80] sm:$0xff] }
  0x32   :  { %808 = vmatpush1.bf16.msra.mxu1 %v807_v33  ;;  %v193_v49 = vld [vmem:[#allocation5 + $0x488] sm:$0xff]  ;;  %v195_v50 = vld [vmem:[#allocation5 + $0x498] sm:$0xff]  ;;  %v813_v52 = vpack.c.bf16 %v67_v47, %v65_v46  ;;  %v66_v54 = vld [vmem:[#allocation5 + $0x90] sm:$0xff]  ;;  %p1104_p5 = por %p1103_p4, %p1102_p3 }
  0x33   :  { %810 = vmatprep.subr.bf16.mxu1 %v809_v39  ;;  %v192_v55 = vld [vmem:[#allocation5 + $0x480] sm:$0xff]  ;;  %v941_v56 = vpack.c.bf16 %v195_v50, %v193_v49  ;;  %v194_v57 = vld [vmem:[#allocation5 + $0x490] sm:$0xff]  ;;  %v69_v58 = vld [vmem:[#allocation5 + $0xa8] sm:$0xff]  ;;  %v815_v62 = vpack.c.bf16 %v66_v54, %v64_v53 }
  0x34   :  { %936 = vmatpush1.bf16.msra.mxu0 %v935_v38  ;;  %v71_v59 = vld [vmem:[#allocation5 + $0xb8] sm:$0xff]  ;;  %v197_v60 = vld [vmem:[#allocation5 + $0x4a8] sm:$0xff]  ;;  %v943_v63 = vpack.c.bf16 %v194_v57, %v192_v55  ;;  %v68_v1 = vld [vmem:[#allocation5 + $0xa0] sm:$0xff]  ;;  %p1105_p6 = pnand %p1104_p5, %p1098_p2 }
  0x35   :  { %938 = vmatprep.subr.bf16.mxu0 %v937_v43  ;;  %v199_v61 = vld [vmem:[#allocation5 + $0x4b8] sm:$0xff]  ;;  %v817_v0 = vpack.c.bf16 %v71_v59, %v69_v58  ;;  %v70_v2 = vld [vmem:[#allocation5 + $0xb0] sm:$0xff]  ;;  %v196_v3 = vld [vmem:[#allocation5 + $0x4a0] sm:$0xff] }
  0x36   :  { %812 = vmatpush1.bf16.msra.mxu1 %v811_v48  ;;  %v945_v4 = vpack.c.bf16 %v199_v61, %v197_v60  ;;  %v198_v5 = vld [vmem:[#allocation5 + $0x4b0] sm:$0xff]  ;;  %v73_v6 = vld [vmem:[#allocation5 + $0xc8] sm:$0xff]  ;;  %v75_v7 = vld [vmem:[#allocation5 + $0xd8] sm:$0xff]  ;;  %v819_v10 = vpack.c.bf16 %v70_v2, %v68_v1 }
  0x37   :  { %814 = vmatprep.subr.bf16.mxu1 %v813_v52  ;;  %v201_v8 = vld [vmem:[#allocation5 + $0x4c8] sm:$0xff]  ;;  %v203_v9 = vld [vmem:[#allocation5 + $0x4d8] sm:$0xff]  ;;  %v947_v11 = vpack.c.bf16 %v198_v5, %v196_v3  ;;  %v821_v12 = vpack.c.bf16 %v75_v7, %v73_v6  ;;  %v72_v13 = vld [vmem:[#allocation5 + $0xc0] sm:$0xff] }
  0x38   :  { %940 = vmatpush1.bf16.msra.mxu0 %v939_v51  ;;  %v74_v14 = vld [vmem:[#allocation5 + $0xd0] sm:$0xff]  ;;  %v200_v15 = vld [vmem:[#allocation5 + $0x4c0] sm:$0xff]  ;;  %v949_v16 = vpack.c.bf16 %v203_v9, %v201_v8  ;;  %v77_v18 = vld [vmem:[#allocation5 + $0xe8] sm:$0xff] }
  0x39   :  { %942 = vmatprep.subr.bf16.mxu0 %v941_v56  ;;  %v202_v17 = vld [vmem:[#allocation5 + $0x4d0] sm:$0xff]  ;;  %v79_v19 = vld [vmem:[#allocation5 + $0xf8] sm:$0xff]  ;;  %v205_v20 = vld [vmem:[#allocation5 + $0x4e8] sm:$0xff]  ;;  %v823_v22 = vpack.c.bf16 %v74_v14, %v72_v13 }
  0x3a   :  { %816 = vmatpush1.bf16.msra.mxu1 %v815_v62  ;;  %v207_v21 = vld [vmem:[#allocation5 + $0x4f8] sm:$0xff]  ;;  %v951_v23 = vpack.c.bf16 %v202_v17, %v200_v15  ;;  %v825_v24 = vpack.c.bf16 %v79_v19, %v77_v18  ;;  %v76_v25 = vld [vmem:[#allocation5 + $0xe0] sm:$0xff]  ;;  %v78_v26 = vld [vmem:[#allocation5 + $0xf0] sm:$0xff] }
  0x3b   :  { %818 = vmatprep.subr.bf16.mxu1 %v817_v0  ;;  %v204_v27 = vld [vmem:[#allocation5 + $0x4e0] sm:$0xff]  ;;  %v953_v28 = vpack.c.bf16 %v207_v21, %v205_v20  ;;  %v206_v29 = vld [vmem:[#allocation5 + $0x4f0] sm:$0xff]  ;;  %v81_v30 = vld [vmem:[#allocation5 + $0x108] sm:$0xff]  ;;  %v827_v34 = vpack.c.bf16 %v78_v26, %v76_v25 }
  0x3c   :  { %944 = vmatpush1.bf16.msra.mxu0 %v943_v63  ;;  %v83_v31 = vld [vmem:[#allocation5 + $0x118] sm:$0xff]  ;;  %v209_v32 = vld [vmem:[#allocation5 + $0x508] sm:$0xff]  ;;  %v955_v35 = vpack.c.bf16 %v206_v29, %v204_v27  ;;  %v80_v37 = vld [vmem:[#allocation5 + $0x100] sm:$0xff] }
  0x3d   :  { %946 = vmatprep.subr.bf16.mxu0 %v945_v4  ;;  %v211_v33 = vld [vmem:[#allocation5 + $0x518] sm:$0xff]  ;;  %v829_v36 = vpack.c.bf16 %v83_v31, %v81_v30  ;;  %v82_v38 = vld [vmem:[#allocation5 + $0x110] sm:$0xff]  ;;  %v208_v39 = vld [vmem:[#allocation5 + $0x500] sm:$0xff] }
  0x3e   :  { %820 = vmatpush1.bf16.msra.mxu1 %v819_v10  ;;  %v957_v40 = vpack.c.bf16 %v211_v33, %v209_v32  ;;  %v210_v41 = vld [vmem:[#allocation5 + $0x510] sm:$0xff]  ;;  %v85_v42 = vld [vmem:[#allocation5 + $0x128] sm:$0xff]  ;;  %v87_v43 = vld [vmem:[#allocation5 + $0x138] sm:$0xff]  ;;  %v831_v46 = vpack.c.bf16 %v82_v38, %v80_v37 }
  0x3f   :  { %822 = vmatprep.subr.bf16.mxu1 %v821_v12  ;;  %v213_v44 = vld [vmem:[#allocation5 + $0x528] sm:$0xff]  ;;  %v215_v45 = vld [vmem:[#allocation5 + $0x538] sm:$0xff]  ;;  %v959_v47 = vpack.c.bf16 %v210_v41, %v208_v39  ;;  %v833_v48 = vpack.c.bf16 %v87_v43, %v85_v42  ;;  %v84_v49 = vld [vmem:[#allocation5 + $0x120] sm:$0xff] }
  0x40   :  { %948 = vmatpush1.bf16.msra.mxu0 %v947_v11  ;;  %v86_v50 = vld [vmem:[#allocation5 + $0x130] sm:$0xff]  ;;  %v212_v51 = vld [vmem:[#allocation5 + $0x520] sm:$0xff]  ;;  %v961_v52 = vpack.c.bf16 %v215_v45, %v213_v44  ;;  %v89_v54 = vld [vmem:[#allocation5 + $0x148] sm:$0xff] }
  0x41   :  { %950 = vmatprep.subr.bf16.mxu0 %v949_v16  ;;  %v214_v53 = vld [vmem:[#allocation5 + $0x530] sm:$0xff]  ;;  %v91_v55 = vld [vmem:[#allocation5 + $0x158] sm:$0xff]  ;;  %v217_v56 = vld [vmem:[#allocation5 + $0x548] sm:$0xff]  ;;  %v835_v58 = vpack.c.bf16 %v86_v50, %v84_v49 }
  0x42   :  { %824 = vmatpush1.bf16.msra.mxu1 %v823_v22  ;;  %v219_v57 = vld [vmem:[#allocation5 + $0x558] sm:$0xff]  ;;  %v963_v59 = vpack.c.bf16 %v214_v53, %v212_v51  ;;  %v837_v60 = vpack.c.bf16 %v91_v55, %v89_v54  ;;  %v88_v61 = vld [vmem:[#allocation5 + $0x140] sm:$0xff]  ;;  %v90_v62 = vld [vmem:[#allocation5 + $0x150] sm:$0xff] }
  0x43   :  { %826 = vmatprep.subr.bf16.mxu1 %v825_v24  ;;  %v216_v63 = vld [vmem:[#allocation5 + $0x540] sm:$0xff]  ;;  %v965_v0 = vpack.c.bf16 %v219_v57, %v217_v56  ;;  %v218_v1 = vld [vmem:[#allocation5 + $0x550] sm:$0xff]  ;;  %v93_v2 = vld [vmem:[#allocation5 + $0x168] sm:$0xff]  ;;  %v839_v6 = vpack.c.bf16 %v90_v62, %v88_v61 }
  0x44   :  { %952 = vmatpush1.bf16.msra.mxu0 %v951_v23  ;;  %v95_v3 = vld [vmem:[#allocation5 + $0x178] sm:$0xff]  ;;  %v221_v4 = vld [vmem:[#allocation5 + $0x568] sm:$0xff]  ;;  %v92_v7 = vld [vmem:[#allocation5 + $0x160] sm:$0xff]  ;;  %v967_v8 = vpack.c.bf16 %v218_v1, %v216_v63 }
  0x45   :  { %954 = vmatprep.subr.bf16.mxu0 %v953_v28  ;;  %v223_v5 = vld [vmem:[#allocation5 + $0x578] sm:$0xff]  ;;  %v841_v9 = vpack.c.bf16 %v95_v3, %v93_v2  ;;  %v94_v10 = vld [vmem:[#allocation5 + $0x170] sm:$0xff]  ;;  %v220_v11 = vld [vmem:[#allocation5 + $0x560] sm:$0xff] }
  0x46   :  { %828 = vmatpush1.bf16.msra.mxu1 %v827_v34  ;;  %v222_v12 = vld [vmem:[#allocation5 + $0x570] sm:$0xff]  ;;  %v969_v13 = vpack.c.bf16 %v223_v5, %v221_v4  ;;  %v97_v14 = vld [vmem:[#allocation5 + $0x188] sm:$0xff]  ;;  %v99_v15 = vld [vmem:[#allocation5 + $0x198] sm:$0xff]  ;;  %v843_v19 = vpack.c.bf16 %v94_v10, %v92_v7 }
  0x47   :  { %830 = vmatprep.subr.bf16.mxu1 %v829_v36  ;;  %v42_v16 = vld [vmem:[#allocation2 + $0x8] sm:$0xff]  ;;  %v225_v17 = vld [vmem:[#allocation5 + $0x588] sm:$0xff]  ;;  %v227_v18 = vld [vmem:[#allocation5 + $0x598] sm:$0xff]  ;;  %v971_v21 = vpack.c.bf16 %v222_v12, %v220_v11  ;;  %v845_v22 = vpack.c.bf16 %v99_v15, %v97_v14 }
  0x48   :  { %956 = vmatpush1.bf16.msra.mxu0 %v955_v35  ;;  %348 = vmatprep.mubr.f32.mxu1 %v42_v16  ;;  %v46_v20 = vld [vmem:[#allocation2 + $0x28] sm:$0xff]  ;;  %v96_v23 = vld [vmem:[#allocation5 + $0x180] sm:$0xff]  ;;  %v973_v26 = vpack.c.bf16 %v227_v18, %v225_v17  ;;  %v101_v28 = vld [vmem:[#allocation5 + $0x1a8] sm:$0xff] }
  0x49   :  { %958 = vmatprep.subr.bf16.mxu0 %v957_v40  ;;  %v98_v24 = vld [vmem:[#allocation5 + $0x190] sm:$0xff]  ;;  %v224_v25 = vld [vmem:[#allocation5 + $0x580] sm:$0xff]  ;;  %v103_v29 = vld [vmem:[#allocation5 + $0x1b8] sm:$0xff]  ;;  %490 = vmatprep.mubr.f32.mxu0 %v46_v20 }
  0x4a   :  { %832 = vmatpush1.bf16.msra.mxu1 %v831_v46  ;;  %v226_v27 = vld [vmem:[#allocation5 + $0x590] sm:$0xff]  ;;  %v229_v30 = vld [vmem:[#allocation5 + $0x5a8] sm:$0xff]  ;;  %v231_v31 = vld [vmem:[#allocation5 + $0x5b8] sm:$0xff]  ;;  %v847_v32 = vpack.c.bf16 %v98_v24, %v96_v23  ;;  %v849_v34 = vpack.c.bf16 %v103_v29, %v101_v28 }
  0x4b   :  { %834 = vmatprep.subr.bf16.mxu1 %v833_v48  ;;  %v975_v33 = vpack.c.bf16 %v226_v27, %v224_v25  ;;  %v100_v35 = vld [vmem:[#allocation5 + $0x1a0] sm:$0xff]  ;;  %v102_v36 = vld [vmem:[#allocation5 + $0x1b0] sm:$0xff]  ;;  %v977_v38 = vpack.c.bf16 %v231_v31, %v229_v30  ;;  %v105_v40 = vld [vmem:[#allocation5 + $0x1c8] sm:$0xff] }
  0x4c   :  { %960 = vmatpush1.bf16.msra.mxu0 %v959_v47  ;;  %v228_v37 = vld [vmem:[#allocation5 + $0x5a0] sm:$0xff]  ;;  %v230_v39 = vld [vmem:[#allocation5 + $0x5b0] sm:$0xff]  ;;  %v107_v41 = vld [vmem:[#allocation5 + $0x1d8] sm:$0xff]  ;;  %v851_v44 = vpack.c.bf16 %v102_v36, %v100_v35 }
  0x4d   :  { %962 = vmatprep.subr.bf16.mxu0 %v961_v52  ;;  %v233_v42 = vld [vmem:[#allocation5 + $0x5c8] sm:$0xff]  ;;  %v235_v43 = vld [vmem:[#allocation5 + $0x5d8] sm:$0xff]  ;;  %v979_v45 = vpack.c.bf16 %v230_v39, %v228_v37  ;;  %v853_v46 = vpack.c.bf16 %v107_v41, %v105_v40  ;;  %v104_v47 = vld [vmem:[#allocation5 + $0x1c0] sm:$0xff]  ;;  %v1129_v40 = vmov 0.0  }
  0x4e   :  { %836 = vmatpush1.bf16.msra.mxu1 %v835_v58  ;;  %v106_v48 = vld [vmem:[#allocation5 + $0x1d0] sm:$0xff]  ;;  %v232_v49 = vld [vmem:[#allocation5 + $0x5c0] sm:$0xff]  ;;  %v981_v50 = vpack.c.bf16 %v235_v43, %v233_v42  ;;  %v109_v52 = vld [vmem:[#allocation5 + $0x1e8] sm:$0xff] }
  0x4f   :  { %838 = vmatprep.subr.bf16.mxu1 %v837_v60  ;;  %v234_v51 = vld [vmem:[#allocation5 + $0x5d0] sm:$0xff]  ;;  %v111_v53 = vld [vmem:[#allocation5 + $0x1f8] sm:$0xff]  ;;  %v237_v54 = vld [vmem:[#allocation5 + $0x5e8] sm:$0xff]  ;;  %v855_v56 = vpack.c.bf16 %v106_v48, %v104_v47 }
  0x50   :  { %964 = vmatpush1.bf16.msra.mxu0 %v963_v59  ;;  %v239_v55 = vld [vmem:[#allocation5 + $0x5f8] sm:$0xff]  ;;  %v983_v57 = vpack.c.bf16 %v234_v51, %v232_v49  ;;  %v857_v58 = vpack.c.bf16 %v111_v53, %v109_v52  ;;  %v108_v59 = vld [vmem:[#allocation5 + $0x1e0] sm:$0xff]  ;;  %v110_v60 = vld [vmem:[#allocation5 + $0x1f0] sm:$0xff] }
  0x51   :  { %966 = vmatprep.subr.bf16.mxu0 %v965_v0  ;;  %v236_v61 = vld [vmem:[#allocation5 + $0x5e0] sm:$0xff]  ;;  %v985_v62 = vpack.c.bf16 %v239_v55, %v237_v54  ;;  %v238_v63 = vld [vmem:[#allocation5 + $0x5f0] sm:$0xff]  ;;  %v113_v0 = vld [vmem:[#allocation5 + $0x208] sm:$0xff]  ;;  %v859_v4 = vpack.c.bf16 %v110_v60, %v108_v59 }
  0x52   :  { %840 = vmatpush1.bf16.msra.mxu1 %v839_v6  ;;  %v115_v1 = vld [vmem:[#allocation5 + $0x218] sm:$0xff]  ;;  %v241_v2 = vld [vmem:[#allocation5 + $0x608] sm:$0xff]  ;;  %v987_v5 = vpack.c.bf16 %v238_v63, %v236_v61  ;;  %v112_v7 = vld [vmem:[#allocation5 + $0x200] sm:$0xff] }
  0x53   :  { %842 = vmatprep.subr.bf16.mxu1 %v841_v9  ;;  %v243_v3 = vld [vmem:[#allocation5 + $0x618] sm:$0xff]  ;;  %v861_v6 = vpack.c.bf16 %v115_v1, %v113_v0  ;;  %v240_v9 = vld [vmem:[#allocation5 + $0x600] sm:$0xff]  ;;  %v242_v11 = vld [vmem:[#allocation5 + $0x610] sm:$0xff] }
  0x54   :  { %968 = vmatpush1.bf16.msra.mxu0 %v967_v8  ;;  %v114_v8 = vld [vmem:[#allocation5 + $0x210] sm:$0xff]  ;;  %v989_v10 = vpack.c.bf16 %v243_v3, %v241_v2  ;;  %v117_v12 = vld [vmem:[#allocation5 + $0x228] sm:$0xff]  ;;  %v247_v15 = vld [vmem:[#allocation5 + $0x638] sm:$0xff] }
  0x55   :  { %970 = vmatprep.subr.bf16.mxu0 %v969_v13  ;;  %v119_v13 = vld [vmem:[#allocation5 + $0x238] sm:$0xff]  ;;  %v245_v14 = vld [vmem:[#allocation5 + $0x628] sm:$0xff]  ;;  %v863_v17 = vpack.c.bf16 %v114_v8, %v112_v7  ;;  %v244_v23 = vld [vmem:[#allocation5 + $0x620] sm:$0xff] }
  0x56   :  { %844 = vmatpush1.bf16.msra.mxu1 %v843_v19  ;;  %v41_v16 = vld [vmem:[#allocation2] sm:$0xff]  ;;  %v991_v19 = vpack.c.bf16 %v242_v11, %v240_v9  ;;  %v865_v20 = vpack.c.bf16 %v119_v13, %v117_v12  ;;  %v993_v24 = vpack.c.bf16 %v247_v15, %v245_v14  ;;  %v246_v25 = vld [vmem:[#allocation5 + $0x630] sm:$0xff]  ;;  %v123_v27 = vld [vmem:[#allocation5 + $0x258] sm:$0xff] }
  0x57   :  { %846 = vmatprep.subr.bf16.mxu1 %v845_v22  ;;  %v45_v18 = vld [vmem:[#allocation2 + $0x20] sm:$0xff]  ;;  %v118_v22 = vld [vmem:[#allocation5 + $0x230] sm:$0xff]  ;;  %v251_v29 = vld [vmem:[#allocation5 + $0x658] sm:$0xff]  ;;  %v995_v31 = vpack.c.bf16 %v246_v25, %v244_v23 }
  0x58   :  { %972 = vmatpush1.bf16.msra.mxu0 %v971_v21  ;;  %v116_v21 = vld [vmem:[#allocation5 + $0x220] sm:$0xff]  ;;  %v249_v28 = vld [vmem:[#allocation5 + $0x648] sm:$0xff]  ;;  %v250_v37 = vld [vmem:[#allocation5 + $0x650] sm:$0xff] }
  0x59   :  { %974 = vmatprep.subr.bf16.mxu0 %v973_v26  ;;  %v121_v26 = vld [vmem:[#allocation5 + $0x248] sm:$0xff]  ;;  %v867_v30 = vpack.c.bf16 %v118_v22, %v116_v21  ;;  %v248_v35 = vld [vmem:[#allocation5 + $0x640] sm:$0xff]  ;;  %v997_v36 = vpack.c.bf16 %v251_v29, %v249_v28  ;;  %v127_v39 = vld [vmem:[#allocation5 + $0x278] sm:$0xff] }
  0x5a   :  { %848 = vmatpush1.bf16.msra.mxu1 %v847_v32  ;;  %v869_v32 = vpack.c.bf16 %v123_v27, %v121_v26  ;;  %v253_v41 = vld [vmem:[#allocation5 + $0x668] sm:$0xff]  ;;  %v255_v42 = vld [vmem:[#allocation5 + $0x678] sm:$0xff]  ;;  %v126_v47 = vld [vmem:[#allocation5 + $0x270] sm:$0xff] }
  0x5b   :  { %850 = vmatprep.subr.bf16.mxu1 %v849_v34  ;;  %v122_v34 = vld [vmem:[#allocation5 + $0x250] sm:$0xff]  ;;  %v252_v48 = vld [vmem:[#allocation5 + $0x660] sm:$0xff]  ;;  %v1001_v49 = vpack.c.bf16 %v255_v42, %v253_v41  ;;  %v129_v51 = vld [vmem:[#allocation5 + $0x288] sm:$0xff] }
  0x5c   :  { %976 = vmatpush1.bf16.msra.mxu0 %v975_v33  ;;  %v120_v33 = vld [vmem:[#allocation5 + $0x240] sm:$0xff]  ;;  %v131_v52 = vld [vmem:[#allocation5 + $0x298] sm:$0xff]  ;;  %v257_v53 = vld [vmem:[#allocation5 + $0x688] sm:$0xff] }
  0x5d   :  { %978 = vmatprep.subr.bf16.mxu0 %v977_v38  ;;  %v125_v38 = vld [vmem:[#allocation5 + $0x268] sm:$0xff]  ;;  %v871_v43 = vpack.c.bf16 %v122_v34, %v120_v33  ;;  %v259_v54 = vld [vmem:[#allocation5 + $0x698] sm:$0xff]  ;;  %v128_v59 = vld [vmem:[#allocation5 + $0x280] sm:$0xff] }
  0x5e   :  { %852 = vmatpush1.bf16.msra.mxu1 %v851_v44  ;;  %v999_v44 = vpack.c.bf16 %v250_v37, %v248_v35  ;;  %v130_v60 = vld [vmem:[#allocation5 + $0x290] sm:$0xff]  ;;  %v256_v61 = vld [vmem:[#allocation5 + $0x680] sm:$0xff]  ;;  %v133_v0 = vld [vmem:[#allocation5 + $0x2a8] sm:$0xff] }
  0x5f   :  { %854 = vmatprep.subr.bf16.mxu1 %v853_v46  ;;  %v124_v46 = vld [vmem:[#allocation5 + $0x260] sm:$0xff]  ;;  %v258_v63 = vld [vmem:[#allocation5 + $0x690] sm:$0xff]  ;;  %v135_v1 = vld [vmem:[#allocation5 + $0x2b8] sm:$0xff] }
  0x60   :  { %980 = vmatpush1.bf16.msra.mxu0 %v979_v45  ;;  %v873_v45 = vpack.c.bf16 %v127_v39, %v125_v38  ;;  %v875_v55 = vpack.c.bf16 %v126_v47, %v124_v46  ;;  %v261_v2 = vld [vmem:[#allocation5 + $0x6a8] sm:$0xff]  ;;  %v263_v3 = vld [vmem:[#allocation5 + $0x6b8] sm:$0xff]  ;;  %v132_v7 = vld [vmem:[#allocation5 + $0x2a0] sm:$0xff] }
  0x61   :  { %982 = vmatprep.subr.bf16.mxu0 %v981_v50  ;;  %v254_v50 = vld [vmem:[#allocation5 + $0x670] sm:$0xff]  ;;  %v260_v9 = vld [vmem:[#allocation5 + $0x6a0] sm:$0xff]  ;;  %v137_v12 = vld [vmem:[#allocation5 + $0x2c8] sm:$0xff] }
  0x62   :  { %856 = vmatpush1.bf16.msra.mxu1 %v855_v56  ;;  %v44_v56 = vld [vmem:[#allocation2 + $0x18] sm:$0xff]  ;;  %v134_v8 = vld [vmem:[#allocation5 + $0x2b0] sm:$0xff]  ;;  %v139_v13 = vld [vmem:[#allocation5 + $0x2d8] sm:$0xff] }
  0x63   :  { %858 = vmatprep.subr.bf16.mxu1 %v857_v58  ;;  %v877_v58 = vpack.c.bf16 %v131_v52, %v129_v51  ;;  %v262_v11 = vld [vmem:[#allocation5 + $0x6b0] sm:$0xff]  ;;  %v265_v14 = vld [vmem:[#allocation5 + $0x6c8] sm:$0xff]  ;;  %v267_v15 = vld [vmem:[#allocation5 + $0x6d8] sm:$0xff] }
  0x64   :  { %984 = vmatpush1.bf16.msra.mxu0 %v983_v57  ;;  %v1003_v57 = vpack.c.bf16 %v254_v50, %v252_v48  ;;  %v264_v21 = vld [vmem:[#allocation5 + $0x6c0] sm:$0xff]  ;;  %v1013_v22 = vpack.c.bf16 %v267_v15, %v265_v14  ;;  %v266_v23 = vld [vmem:[#allocation5 + $0x6d0] sm:$0xff]  ;;  %v143_v25 = vld [vmem:[#allocation5 + $0x2f8] sm:$0xff] }
  0x65   :  { %986 = vmatprep.subr.bf16.mxu0 %v985_v62  ;;  %v1005_v62 = vpack.c.bf16 %v259_v54, %v257_v53  ;;  %v269_v26 = vld [vmem:[#allocation5 + $0x6e8] sm:$0xff]  ;;  %v271_v27 = vld [vmem:[#allocation5 + $0x6f8] sm:$0xff]  ;;  %v1015_v29 = vpack.c.bf16 %v266_v23, %v264_v21  ;;  %v268_v33 = vld [vmem:[#allocation5 + $0x6e0] sm:$0xff] }
  0x66   :  { %860 = vmatpush1.bf16.msra.mxu1 %v859_v4  ;;  %v879_v4 = vpack.c.bf16 %v130_v60, %v128_v59  ;;  %v1017_v34 = vpack.c.bf16 %v271_v27, %v269_v26  ;;  %v270_v35 = vld [vmem:[#allocation5 + $0x6f0] sm:$0xff]  ;;  %v147_v37 = vld [vmem:[#allocation5 + $0x318] sm:$0xff]  ;;  %v144_v41 = vld [vmem:[#allocation5 + $0x300] sm:$0xff] }
  0x67   :  { %862 = vmatprep.subr.bf16.mxu1 %v861_v6  ;;  %v881_v6 = vpack.c.bf16 %v135_v1, %v133_v0  ;;  %v1019_v39 = vpack.c.bf16 %v270_v35, %v268_v33  ;;  %v146_v42 = vld [vmem:[#allocation5 + $0x310] sm:$0xff]  ;;  %v47_v46 = vld [vmem:[#allocation2 + $0x30] sm:$0xff]  ;;  %v148_v48 = vld [vmem:[#allocation5 + $0x320] sm:$0xff] }
  0x68   :  { %988 = vmatpush1.bf16.msra.mxu0 %v987_v5  ;;  %v1007_v5 = vpack.c.bf16 %v258_v63, %v256_v61  ;;  %v153_v50 = vld [vmem:[#allocation5 + $0x348] sm:$0xff]  ;;  %v155_v51 = vld [vmem:[#allocation5 + $0x358] sm:$0xff]  ;;  %v152_v54 = vld [vmem:[#allocation5 + $0x340] sm:$0xff] }
  0x69   :  { %990 = vmatprep.subr.bf16.mxu0 %v989_v10  ;;  %349 = vmatmul.mubr.f32.vlgmr.msra.gmra.mrb[0].mxu1 %v41_v16  ;;  %v1009_v10 = vpack.c.bf16 %v263_v3, %v261_v2  ;;  %v883_v16 = vpack.c.bf16 %v134_v8, %v132_v7  ;;  %v901_v53 = vpack.c.bf16 %v155_v51, %v153_v50  ;;  %v156_v60 = vld [vmem:[#allocation5 + $0x360] sm:$0xff]  ;;  %v158_v61 = vld [vmem:[#allocation5 + $0x370] sm:$0xff]  ;;  %v163_v63 = vld [vmem:[#allocation5 + $0x398] sm:$0xff] }
  0x6a   :  { %864 = vmatpush1.bf16.msra.mxu1 %v863_v17  ;;  %419 = vmatprep.mubr.f32.mxu1 %v44_v56  ;;  %v1011_v17 = vpack.c.bf16 %v262_v11, %v260_v9  ;;  %v157_v56 = vld [vmem:[#allocation5 + $0x368] sm:$0xff]  ;;  %v907_v0 = vpack.c.bf16 %v158_v61, %v156_v60  ;;  %v160_v2 = vld [vmem:[#allocation5 + $0x380] sm:$0xff]  ;;  %v162_v3 = vld [vmem:[#allocation5 + $0x390] sm:$0xff] }
  0x6b   :  { %491 = vmatmul.mubr.f32.vlgmr.msra.gmra.mrb[0].mxu0 %v45_v18  ;;  %866 = vmatprep.subr.bf16.mxu1 %v865_v20  ;;  %v885_v18 = vpack.c.bf16 %v139_v13, %v137_v12  ;;  %v138_v20 = vld [vmem:[#allocation5 + $0x2d0] sm:$0xff]  ;;  %v164_v8 = vld [vmem:[#allocation5 + $0x3a0] sm:$0xff]  ;;  %v171_v11 = vld [vmem:[#allocation5 + $0x3d8] sm:$0xff] }
  0x6c   :  { %992 = vmatpush1.bf16.msra.mxu0 %v991_v19  ;;  %561 = vmatprep.mubr.f32.mxu0 %v1129_v40  ;;  %v136_v19 = vld [vmem:[#allocation5 + $0x2c0] sm:$0xff]  ;;  %v166_v9 = vld [vmem:[#allocation5 + $0x3b0] sm:$0xff]  ;;  %v43_v23 = vld [vmem:[#allocation2 + $0x10] sm:$0xff] }
  0x6d   :  { %994 = vmatprep.subr.bf16.mxu0 %v993_v24  ;;  %v141_v24 = vld [vmem:[#allocation5 + $0x2e8] sm:$0xff]  ;;  %v887_v28 = vpack.c.bf16 %v138_v20, %v136_v19  ;;  %v915_v12 = vpack.c.bf16 %v166_v9, %v164_v8  ;;  %v168_v14 = vld [vmem:[#allocation5 + $0x3c0] sm:$0xff]  ;;  %v170_v15 = vld [vmem:[#allocation5 + $0x3d0] sm:$0xff] }
  0x6e   :  { %868 = vmatpush1.bf16.msra.mxu1 %v867_v30  ;;  %v889_v30 = vpack.c.bf16 %v143_v25, %v141_v24  ;;  %v172_v20 = vld [vmem:[#allocation5 + $0x3e0] sm:$0xff]  ;;  %v174_v21 = vld [vmem:[#allocation5 + $0x3f0] sm:$0xff]  ;;  %v274_v24 = vlaneseq  ;;  %v272_v26 = vld [vmem:[%s1285_s2] sm:$0x3]  ;;  %s1130_s2 = smov 104  }
  0x6f   :  { %870 = vmatprep.subr.bf16.mxu1 %v869_v32  ;;  %v142_v32 = vld [vmem:[#allocation5 + $0x2f0] sm:$0xff] }
  0x70   :  { %996 = vmatpush1.bf16.msra.mxu0 %v995_v31  ;;  %v140_v31 = vld [vmem:[#allocation5 + $0x2e0] sm:$0xff]  ;;  %v275_v25 = vshrl.u32 %v274_v24, 7 }
  0x71   :  { %998 = vmatprep.subr.bf16.mxu0 %v997_v36  ;;  %v145_v36 = vld [vmem:[#allocation5 + $0x308] sm:$0xff]  ;;  %v891_v38 = vpack.c.bf16 %v142_v32, %v140_v31 }
  0x72   :  { %872 = vmatpush1.bf16.msra.mxu1 %v871_v43  ;;  %v893_v40 = vpack.c.bf16 %v147_v37, %v145_v36  ;;  %v149_v43 = vld [vmem:[#allocation5 + $0x328] sm:$0xff]  ;;  %v280_v27 = vsub.s32 1, %v275_v25  ;;  %v276_v31 = vsub.s32 0, %v275_v25 }
  0x73   :  { %874 = vmatprep.subr.bf16.mxu1 %v873_v45  ;;  %v895_v45 = vpack.c.bf16 %v146_v42, %v144_v41 }
  0x74   :  { %1000 = vmatpush1.bf16.msra.mxu0 %v999_v44  ;;  %v151_v44 = vld [vmem:[#allocation5 + $0x338] sm:$0xff]  ;;  %v277_v32 = vrot.slane %v272_v26, %v276_v31 }
  0x75   :  { %1002 = vmatprep.subr.bf16.mxu0 %v1001_v49  ;;  %v897_v47 = vpack.c.bf16 %v151_v44, %v149_v43  ;;  %v150_v49 = vld [vmem:[#allocation5 + $0x330] sm:$0xff] }
  0x76   :  { %876 = vmatpush1.bf16.msra.mxu1 %v875_v55  ;;  %v899_v52 = vpack.c.bf16 %v150_v49, %v148_v48  ;;  %v154_v55 = vld [vmem:[#allocation5 + $0x350] sm:$0xff] }
  0x77   :  { %878 = vmatprep.subr.bf16.mxu1 %v877_v58  ;;  %v903_v58 = vpack.c.bf16 %v154_v55, %v152_v54 }
  0x78   :  { %1004 = vmatpush1.bf16.msra.mxu0 %v1003_v57  ;;  %v159_v57 = vld [vmem:[#allocation5 + $0x378] sm:$0xff] }
  0x79   :  { %1006 = vmatprep.subr.bf16.mxu0 %v1005_v62  ;;  %v905_v59 = vpack.c.bf16 %v159_v57, %v157_v56  ;;  %v161_v62 = vld [vmem:[#allocation5 + $0x388] sm:$0xff] }
  0x7a   :  { %880 = vmatpush1.bf16.msra.mxu1 %v879_v4  ;;  %v909_v1 = vpack.c.bf16 %v163_v63, %v161_v62  ;;  %v165_v4 = vld [vmem:[#allocation5 + $0x3a8] sm:$0xff] }
  0x7b   :  { %882 = vmatprep.subr.bf16.mxu1 %v881_v6  ;;  %v911_v6 = vpack.c.bf16 %v162_v3, %v160_v2 }
  0x7c   :  { %1008 = vmatpush1.bf16.msra.mxu0 %v1007_v5  ;;  %v167_v5 = vld [vmem:[#allocation5 + $0x3b8] sm:$0xff] }
  0x7d   :  { %1010 = vmatprep.subr.bf16.mxu0 %v1009_v10  ;;  %v913_v7 = vpack.c.bf16 %v167_v5, %v165_v4  ;;  %v169_v10 = vld [vmem:[#allocation5 + $0x3c8] sm:$0xff] }
  0x7e   :  { %884 = vmatpush1.bf16.msra.mxu1 %v883_v16  ;;  %v917_v13 = vpack.c.bf16 %v171_v11, %v169_v10  ;;  %v173_v16 = vld [vmem:[#allocation5 + $0x3e8] sm:$0xff] }
  0x7f   :  { %886 = vmatprep.subr.bf16.mxu1 %v885_v18  ;;  %v919_v18 = vpack.c.bf16 %v170_v15, %v168_v14 }
  0x80   :  { %1012 = vmatpush1.bf16.msra.mxu0 %v1011_v17  ;;  %v175_v17 = vld [vmem:[#allocation5 + $0x3f8] sm:$0xff] }
  0x81   :  { %1014 = vmatprep.subr.bf16.mxu0 %v1013_v22  ;;  %v921_v19 = vpack.c.bf16 %v175_v17, %v173_v16  ;;  %v923_v22 = vpack.c.bf16 %v174_v21, %v172_v20 }
  0x82   :  { %888 = vmatpush1.bf16.msra.mxu1 %v887_v28  ;;  %v281_v28 = vrot.slane %v272_v26, %v280_v27 }
  0x83   :  { %890 = vmatprep.subr.bf16.mxu1 %v889_v30 }
  0x84   :  { %1016 = vmatpush1.bf16.msra.mxu0 %v1015_v29 }
  0x85   :  { %1018 = vmatprep.subr.bf16.mxu0 %v1017_v34 }
  0x86   :  { %892 = vmatpush1.bf16.msra.mxu1 %v891_v38 }
  0x87   :  { %894 = vmatprep.subr.bf16.mxu1 %v893_v40 }
  0x88   :  { %1020 = vmatpush1.bf16.msra.mxu0 %v1019_v39 }
  0x8a   :  { %896 = vmatpush1.bf16.msra.mxu1 %v895_v45 }
  0x8b   :  { %562 = vmatmul.mubr.f32.vlgmr.msra.gmra.mrb[0].mxu0 %v47_v46  ;;  %898 = vmatprep.subr.bf16.mxu1 %v897_v47 }
  0x8e   :  { %900 = vmatpush1.bf16.msra.mxu1 %v899_v52 }
  0x8f   :  { %902 = vmatprep.subr.bf16.mxu1 %v901_v53 }
  0x92   :  { %904 = vmatpush1.bf16.msra.mxu1 %v903_v58 }
  0x93   :  { %906 = vmatprep.subr.bf16.mxu1 %v905_v59 }
  0x96   :  { %908 = vmatpush1.bf16.msra.mxu1 %v907_v0 }
  0x97   :  { %910 = vmatprep.subr.bf16.mxu1 %v909_v1 }
  0x9a   :  { %912 = vmatpush1.bf16.msra.mxu1 %v911_v6 }
  0x9b   :  { %914 = vmatprep.subr.bf16.mxu1 %v913_v7 }
  0x9e   :  { %916 = vmatpush1.bf16.msra.mxu1 %v915_v12 }
  0x9f   :  { %918 = vmatprep.subr.bf16.mxu1 %v917_v13 }
  0xa2   :  { %920 = vmatpush1.bf16.msra.mxu1 %v919_v18 }
  0xa3   :  { %922 = vmatprep.subr.bf16.mxu1 %v921_v19 }
  0xa6   :  { %924 = vmatpush1.bf16.msra.mxu1 %v923_v22 }
  0xa9   :  { %420 = vmatmul.mubr.f32.vlgmr.msra.gmra.mrb[0].mxu1 %v43_v23 }
 0x15e   :  { %v563_v29 = vpop.f32.mrb[0].mxu0 }
 0x15f   :  { %v565_v30 = vpop.f32.mrb[1].mxu0 }
 0x17c   :  { %v421_v33 = vpop.f32.mrb[0].mxu1 }
 0x17d   :  { %v1021_v34 = vadd.f32 %v421_v33, %v277_v32  ;;  %v423_v35 = vpop.f32.mrb[1].mxu1 }
 0x17e   :  { %v1023_v36 = vadd.f32 %v423_v35, %v281_v28 }
 0x17f   :  { %v1200_v37 = vadd.f32 %v1021_v34, %v563_v29 }
 0x180   :  { %v1202_v38 = vadd.f32 %v1023_v36, %v565_v30 }
 0x181   :  { %778 = vst [vmem:[#allocation7] sm:$0xff] %v1200_v37  ;;  %v568_v39 = vmul.f32 %v1200_v37, %v1200_v37 }
 0x183   :  { %570 = vrot.lane.b32.xlu0 %v568_v39, %s1130_s2 }
 0x187   :  { %574 = vrot.lane.b32.xlu0 %v568_v39, %s1131_s11 }
 0x18b   :  { %591 = vrot.lane.b32.xlu0 %v1200_v37, %s1132_s12 }
 0x1f5   :  { %v571_v40 = vpop.permute.xlu0 %570 }
 0x1f6   :  { %v573_v41 = vadd.f32 %v571_v40, %v568_v39 }
 0x1f9   :  { %v575_v42 = vpop.permute.xlu0 %574 }
 0x1fa   :  { %v577_v43 = vadd.f32 %v575_v42, %v573_v41 }
 0x1fc   :  { %v578_v44 = vmax.f32 %v577_v43, 1e-24 }
 0x1fd   :  { %v592_v48 = vpop.permute.xlu0 %591 }
 0x1fe   :  { %1049 = vrsqrt.f32 %v578_v44 }
 0x208   :  { %v1050_v45 = vpop.eup %1049 }
 0x209   :  { %582 = vrot.lane.b32.xlu1 %v1050_v45, %s1133_s13  ;;  %v1229_v55 = vmul.f32 %v1050_v45, %v1200_v37 }
 0x20b   :  { %v594_v57 = vmul.f32 %v592_v48, %v1229_v55 }
 0x20d   :  { %586 = vrot.lane.b32.xlu1 %v1050_v45, %s1134_s14 }
 0x211   :  { %602 = vrot.lane.b32.xlu1 %v1202_v38, %s1132_s12 }
 0x27b   :  { %v583_v46 = vpop.permute.xlu1 %582 }
 0x27c   :  { %v1214_v47 = vmul.f32 %v1200_v37, %v583_v46 }
 0x27e   :  { %v595_v49 = vmul.f32 %v592_v48, %v1214_v47 }
 0x27f   :  { %v587_v50 = vpop.permute.xlu1 %586 }
 0x280   :  { %597 = vrot.lane.b32.xlu0 %v595_v49, %s1130_s2  ;;  %v1219_v51 = vmul.f32 %v1200_v37, %v587_v50 }
 0x283   :  { %v603_v52 = vpop.permute.xlu1 %602 }
 0x284   :  { %v605_v53 = vsel %vm604_vm0, %v592_v48, %v603_v52  ;;  %620 = vrot.lane.b32.xlu0 %v1214_v47, %s1130_s2 }
 0x285   :  { %v607_v54 = vmul.f32 %v605_v53, %v1219_v51 }
 0x287   :  { %609 = vrot.lane.b32.xlu1 %v607_v54, %s1131_s11 }
 0x28b   :  { %630 = vrot.lane.b32.xlu1 %v1219_v51, %s1131_s11 }
 0x2f2   :  { %v598_v56 = vpop.permute.xlu0 %597 }
 0x2f3   :  { %v600_v58 = vadd.f32 %v598_v56, %v594_v57 }
 0x2f6   :  { %v621_v61 = vpop.permute.xlu0 %620 }
 0x2f9   :  { %v610_v59 = vpop.permute.xlu1 %609 }
 0x2fa   :  { %v612_v60 = vadd.f32 %v610_v59, %v600_v58 }
 0x2fc   :  { %v623_v62 = vmul.f32 %v621_v61, %v612_v60  ;;  %v613_v1 = vmul.f32 %v612_v60, %v1229_v55 }
 0x2fd   :  { %v631_v63 = vpop.permute.xlu1 %630 }
 0x2fe   :  { %v633_v0 = vmul.f32 %v631_v63, %v612_v60  ;;  %625 = vrot.lane.b32.xlu0 %v623_v62, %s1135_s15 }
 0x300   :  { %635 = vrot.lane.b32.xlu1 %v633_v0, %s1136_s16 }
 0x302   :  { %615 = vrot.lane.b32.xlu0 %v613_v1, %s1137_s17 }
 0x370   :  { %v626_v2 = vpop.permute.xlu0 %625 }
 0x371   :  { %v628_v3 = vsub.f32 %v1200_v37, %v626_v2 }
 0x372   :  { %v636_v4 = vpop.permute.xlu1 %635 }
 0x373   :  { %v641_v5 = vmul.f32 %v628_v3, %v628_v3  ;;  %v638_v6 = vsub.f32 %v1200_v37, %v636_v4  ;;  %v639_v7 = vsub.f32 %v1202_v38, %v636_v4 }
 0x374   :  { %v616_v10 = vpop.permute.xlu0 %615 }
 0x375   :  { %v647_v8 = vmul.f32 %v638_v6, %v638_v6  ;;  %643 = vrot.lane.b32.xlu1 %v641_v5, %s1130_s2  ;;  %v648_v9 = vmul.f32 %v639_v7, %v639_v7  ;;  %v618_v11 = vsub.f32 %v1200_v37, %v616_v10 }
 0x377   :  { %651 = vrot.lane.b32.xlu0 %v647_v8, %s1131_s11  ;;  %v640_v13 = vmul.f32 %v618_v11, %v618_v11 }
 0x379   :  { %653 = vrot.lane.b32.xlu1 %v648_v9, %s1131_s11 }
 0x3e7   :  { %v644_v12 = vpop.permute.xlu1 %643 }
 0x3e8   :  { %v646_v14 = vadd.f32 %v644_v12, %v640_v13 }
 0x3e9   :  { %v652_v15 = vpop.permute.xlu0 %651 }
 0x3eb   :  { %v654_v16 = vpop.permute.xlu1 %653 }
 0x3ec   :  { %v656_v17 = vsel %vm655_vm1, %v652_v15, %v654_v16 }
 0x3ed   :  { %v658_v18 = vadd.f32 %v656_v17, %v646_v14 }
 0x3ef   :  { %v659_v19 = vmax.f32 %v658_v18, 1e-24 }
 0x3f1   :  { %1051 = vrsqrt.f32 %v659_v19 }
 0x3fb   :  { %v1052_v20 = vpop.eup %1051 }
 0x3fc   :  { %663 = vrot.lane.b32.xlu1 %v1052_v20, %s1133_s13  ;;  %667 = vrot.lane.b32.xlu0 %v1052_v20, %s1134_s14  ;;  %v661_v26 = vmul.f32 %v1052_v20, %v618_v11 }
 0x46e   :  { %v668_v21 = vpop.permute.xlu0 %667  ;;  %v664_v24 = vpop.permute.xlu1 %663 }
 0x46f   :  { %v670_v22 = vmul.f32 %v668_v21, %v638_v6  ;;  %v671_v23 = vmul.f32 %v668_v21, %v639_v7  ;;  %v666_v25 = vmul.f32 %v664_v24, %v628_v3 }
 0x471   :  { %699 = vrot.lane.b32.xlu1 %v671_v23, %s1138_s18  ;;  %697 = vrot.lane.b32.xlu0 %v670_v22, %s1138_s18 }
 0x475   :  { %683 = vrot.lane.b32.xlu0 %v666_v25, %s1131_s11  ;;  %714 = vrot.lane.b32.xlu1 %v661_v26, %s1131_s11 }
 0x479   :  { %693 = vrot.lane.b32.xlu0 %v661_v26, %s1130_s2  ;;  %674 = vrot.lane.b32.xlu1 %v670_v22, %s1139_s19 }
 0x47d   :  { %676 = vrot.lane.b32.xlu0 %v671_v23, %s1139_s19 }
 0x481   :  { %710 = vrot.lane.b32.xlu0 %v666_v25, %s1139_s19 }
 0x4e3   :  { %v700_v27 = vpop.permute.xlu1 %699  ;;  %v698_v28 = vpop.permute.xlu0 %697 }
 0x4e4   :  { %v702_v29 = vsel %vm701_vm2, %v698_v28, %v700_v27 }
 0x4e5   :  { %v704_v30 = vmul.f32 %v702_v29, %v1229_v55 }
 0x4e7   :  { %v684_v31 = vpop.permute.xlu0 %683  ;;  %706 = vrot.lane.b32.xlu1 %v704_v30, %s1134_s14  ;;  %v715_v32 = vpop.permute.xlu1 %714 }
 0x4e8   :  { %v686_v33 = vmul.f32 %v684_v31, %v1219_v51  ;;  %v717_v34 = vmul.f32 %v715_v32, %v1214_v47 }
 0x4ea   :  { %719 = vrot.lane.b32.xlu0 %v717_v34, %s1130_s2 }
 0x4eb   :  { %688 = vrot.lane.b32.xlu1 %v686_v33, %s1130_s2  ;;  %v694_v35 = vpop.permute.xlu0 %693  ;;  %v675_v37 = vpop.permute.xlu1 %674 }
 0x4ec   :  { %v696_v49 = vmul.f32 %v694_v35, %v1219_v51 }
 0x4ee   :  { %744 = vrot.lane.b32.xlu0 %v1219_v51, %s1140_s20 }
 0x4ef   :  { %737 = vrot.lane.b32.xlu1 %v666_v25, %s1128_s7  ;;  %v677_v36 = vpop.permute.xlu0 %676 }
 0x4f0   :  { %v679_v40 = vsel %vm678_vm3, %v675_v37, %v677_v36 }
 0x4f1   :  { %v681_v44 = vmul.f32 %v679_v40, %v1214_v47 }
 0x4f2   :  { %749 = vrot.lane.b32.xlu0 %v671_v23, %s1141_s21 }
 0x4f3   :  { %724 = vrot.lane.b32.xlu1 %v1229_v55, %s1128_s7  ;;  %v711_v39 = vpop.permute.xlu0 %710 }
 0x4f4   :  { %v713_v42 = vmul.f32 %v711_v39, %v1229_v55 }
 0x4f7   :  { %747 = vrot.lane.b32.xlu1 %v670_v22, %s1141_s21 }
 0x4fb   :  { %727 = vrot.lane.b32.xlu1 %v661_v26, %s1135_s15 }
 0x559   :  { %v707_v41 = vpop.permute.xlu1 %706 }
 0x55a   :  { %v709_v50 = vsub.f32 %v696_v49, %v707_v41 }
 0x55c   :  { %v720_v43 = vpop.permute.xlu0 %719 }
 0x55d   :  { %v722_v45 = vsub.f32 %v713_v42, %v720_v43  ;;  %v689_v46 = vpop.permute.xlu1 %688 }
 0x55e   :  { %v691_v48 = vsub.f32 %v681_v44, %v689_v46 }
 0x55f   :  { %755 = vrot.lane.b32.xlu1 %v722_v45, %s1131_s11 }
 0x560   :  { %731 = vrot.lane.b32.xlu0 %v691_v48, %s1142_s22  ;;  %v745_v54 = vpop.permute.xlu0 %744 }
 0x561   :  { %v738_v52 = vpop.permute.xlu1 %737 }
 0x563   :  { %758 = vrot.lane.b32.xlu1 %v1202_v38, %s1143_s23 }
 0x564   :  { %741 = vrot.lane.b32.xlu0 %v709_v50, %s1143_s23  ;;  %v750_v56 = vpop.permute.xlu0 %749 }
 0x565   :  { %v725_v53 = vpop.permute.xlu1 %724 }
 0x566   :  { %v762_v61 = vsel %vm761_vm4, %v1202_v38, %v725_v53 }
 0x568   :  { %734 = vrot.lane.b32.xlu0 %v1214_v47, %s1141_s21 }
 0x569   :  { %v748_v55 = vpop.permute.xlu1 %747 }
 0x56a   :  { %v752_v62 = vsel %vm751_vm5, %v748_v55, %v750_v56 }
 0x56d   :  { %v728_v57 = vpop.permute.xlu1 %727 }
 0x56e   :  { %v764_v63 = vsel %vm763_vm6, %v762_v61, %v728_v57 }
 0x5d1   :  { %v756_v59 = vpop.permute.xlu1 %755 }
 0x5d2   :  { %v732_v58 = vpop.permute.xlu0 %731 }
 0x5d3   :  { %v765_v1 = vsel %vm751_vm5, %v764_v63, %v732_v58 }
 0x5d5   :  { %v759_v2 = vpop.permute.xlu1 %758 }
 0x5d6   :  { %v742_v51 = vpop.permute.xlu0 %741 }
 0x5d7   :  { %v770_v60 = vsel %vm701_vm2, %v738_v52, %v742_v51 }
 0x5d8   :  { %v771_v47 = vsel %vm678_vm3, %v770_v60, %v745_v54 }
 0x5d9   :  { %v772_v0 = vsel %vm604_vm0, %v771_v47, %v752_v62 }
 0x5da   :  { %v773_v3 = vsel %vm655_vm1, %v772_v0, %v756_v59  ;;  %v735_v4 = vpop.permute.xlu0 %734 }
 0x5db   :  { %v767_v5 = vsel %vm766_vm7, %v765_v1, %v735_v4  ;;  %v775_v6 = vsel %vm774_vm8, %v773_v3, %v759_v2 }
 0x5dc   :  { %v769_v38 = vsel %vm768_vm9, %v767_v5, %v738_v52  ;;  %v777_v7 = vsel %vm776_vm10, %v775_v6, 0.0 }
 0x5dd   :  { %779 = vst [vmem:[#allocation7 + $0x8] sm:$0xff] %v769_v38  ;;  %780 = vst [vmem:[#allocation7 + $0x10] sm:$0xff] %v777_v7 }
 0x5de   :  { %1108 = shalt.err (!%p1105_p6)
}
 0x5df   :  { %s1109_s29 = scalar_lea.hbm %s1286_s3, 384 }
 0x5e0   :  { %p1110_p7 = scmp.ne.s32.totalorder %s1286_s3, %s1109_s29  ;;  %p1113_p8 = scmp.lt.u32.totalorder %s1109_s29, %s1286_s3 }
 0x5e2   :  { %p1115_p9 = pnand %p1113_p8, %p1110_p7 }
 0x5e4   :  { %1118 = shalt.err (!%p1115_p9)
}
 0x5e5   :  { %790 = dma.vmem_to_hbm [thread:$0]  %s788_s25, 384, %s1286_s3, [#allocation4]  }
 0x5e6   :  { %1123 = dma.done.wait [#allocation4], 384  }
 0x5e7   :  { %1124 = vsyncadd [#allocation4], 4294966912 }
 0x5e8   :  { %794 = vsyncpa [#allocation3], 1 }
 0x5e9   :  { %795 = vsyncpa [#allocation6], 1 }
 0x5ea   :  { %796 = vsyncpa [#allocation4], 1 }

</bundles_post_ra>
